<compile_context>
chip_gen: v6e
topology: v6e:2x2x1
jax: 0.10.0
libtpu: 0.0.40
codegen_flags: <defaults>
</compile_context>

<pallas_src>
import jax
import jax.numpy as jnp
from jax import lax
from jax.experimental import pallas as pl
from jax.experimental.pallas import tpu as pltpu


# Packed parameter layout (float32, 67 scalars total):
#   [ 0:32)  W1  (4,8) row-major   Conv2d(4->8, k=1) weight in matmul form
#   [32:40)  b1  (8,)
#   [40:64)  W2' (8,3) row-major   Conv2d(8->3, k=1) weight with BN folded in
#   [64:67)  b2' (3,)              bias with BN folded in
_W1_OFF, _B1_OFF, _W2_OFF, _B2_OFF, _NPARAMS = 0, 32, 40, 64, 67

_LANES = 128          # lane width: pixels live on the lane axis
_CHUNK_ROWS = 32      # 32 rows x 128 lanes = 4096 px per inner chunk (~16-32 live vregs)
_MAX_TILE_ROWS = 2048 # 262144 px per grid block (~14.7 MiB double-buffered @ 56 B/px)


def _fusion_kernel(p_ref, a_ref, b_ref, o_ref):
    # p_ref: SMEM (67,) packed params
    # a_ref: VMEM (1, 3, Tr, 128), b_ref: VMEM (1, 1, Tr, 128), o_ref: VMEM (1, 3, Tr, 128)
    # All per-channel slices are dense 2-D (rows, 128) tiles -> full (8,128) vregs.

    # Hoist all 67 scalar reads above the chunk loop (JAX does not CSE per-iter).
    w1 = [[p_ref[_W1_OFF + c * 8 + d] for d in range(8)] for c in range(4)]
    b1 = [p_ref[_B1_OFF + d] for d in range(8)]
    w2 = [[p_ref[_W2_OFF + d * 3 + e] for e in range(3)] for d in range(8)]
    b2 = [p_ref[_B2_OFF + e] for e in range(3)]

    tr = a_ref.shape[2]

    def process(row0, nrows):
        # nrows is static; row0 may be traced (8/32-aligned in the fori path).
        xs = [a_ref[0, c, pl.ds(row0, nrows), :] for c in range(3)]
        xs.append(b_ref[0, 0, pl.ds(row0, nrows), :])

        ys = [None, None, None]
        for d in range(8):
            # Hidden channel d: h = LeakyReLU_0.2( sum_c W1[c,d]*x_c + b1[d] )
            h = xs[0] * w1[0][d]
            for c in range(1, 4):
                h = h + xs[c] * w1[c][d]
            h = h + b1[d]
            h = jnp.maximum(h, 0.2 * h)          # LeakyReLU(0.2): mul + max
            # Interleave the second conv (BN already folded): drop h immediately.
            for e in range(3):
                t = h * w2[d][e]
                ys[e] = t if ys[e] is None else ys[e] + t

        for e in range(3):
            o_ref[0, e, pl.ds(row0, nrows), :] = (ys[e] + b2[e]).astype(o_ref.dtype)

    n_full = tr // _CHUNK_ROWS
    tail = tr - n_full * _CHUNK_ROWS

    if n_full > 0:
        if n_full == 1 and tail == 0:
            process(0, tr)
        else:
            def body(i, carry):
                row0 = pl.multiple_of(i * _CHUNK_ROWS, _CHUNK_ROWS)
                process(row0, _CHUNK_ROWS)
                return carry
            lax.fori_loop(0, n_full, body, 0, unroll=False)
    if tail > 0:
        process(n_full * _CHUNK_ROWS, tail)


def _choose_tiling(hw):
    """Pick (tile_rows, padded_rows) for the (rows, 128) pixel layout."""
    rows = pl.cdiv(hw, _LANES)
    if rows <= _MAX_TILE_ROWS:
        # Full second-minor extent: always layout-legal, single block per image.
        return rows, rows
    n_blocks = pl.cdiv(rows, _MAX_TILE_ROWS)
    tile_rows = pl.cdiv(rows, n_blocks)
    # Round to a multiple of the chunk size (=> multiple of 8): sublane-aligned slices.
    tile_rows = pl.cdiv(tile_rows, _CHUNK_ROWS) * _CHUNK_ROWS
    padded_rows = tile_rows * pl.cdiv(rows, tile_rows)
    return tile_rows, padded_rows


def simple_input_fusion(a, b, packed_params):
    """a: (N,3,H,W) f32, b: (N,1,H,W) f32  ->  (N,3,H,W) f32. NCHW end to end."""
    N, Ca, H, W = a.shape
    assert Ca == 3 and b.shape == (N, 1, H, W)
    a = a.astype(jnp.float32)
    b = b.astype(jnp.float32)

    HW = H * W
    tile_rows, padded_rows = _choose_tiling(HW)
    n_tiles = padded_rows // tile_rows
    P = padded_rows * _LANES

    # Free reshapes (collapse trailing contiguous dims); no transpose, no concat.
    a3 = a.reshape(N, 3, HW)
    b3 = b.reshape(N, 1, HW)
    if P != HW:
        # Pad the pixel axis so rows is a multiple of the tile (zero pixels are
        # computed on and sliced off below; avoids a whole-image fallback block).
        pad = ((0, 0), (0, 0), (0, P - HW))
        a3 = jnp.pad(a3, pad)
        b3 = jnp.pad(b3, pad)
    a4 = a3.reshape(N, 3, padded_rows, _LANES)
    b4 = b3.reshape(N, 1, padded_rows, _LANES)

    npx = N * P
    cost = pl.CostEstimate(flops=128 * npx, transcendentals=0, bytes_accessed=28 * npx)

    out = pl.pallas_call(
        _fusion_kernel,
        out_shape=jax.ShapeDtypeStruct((N, 3, padded_rows, _LANES), jnp.float32),
        grid=(N, n_tiles),
        in_specs=[
            pl.BlockSpec(memory_space=pltpu.MemorySpace.SMEM),                 # packed params
            pl.BlockSpec((1, 3, tile_rows, _LANES), lambda n, t: (n, 0, t, 0)),  # rgb
            pl.BlockSpec((1, 1, tile_rows, _LANES), lambda n, t: (n, 0, t, 0)),  # mask
        ],
        out_specs=pl.BlockSpec((1, 3, tile_rows, _LANES), lambda n, t: (n, 0, t, 0)),
        compiler_params=pltpu.CompilerParams(
            dimension_semantics=("parallel", "parallel"),
            vmem_limit_bytes=32 * 1024 * 1024),
        cost_estimate=cost,
    )(packed_params, a4, b4)

    out = out.reshape(N, 3, P)
    if P != HW:
        out = out[:, :, :HW]
    return out.reshape(N, 3, H, W)


def make_params(key):
    """Deterministic raw parameters matching the PyTorch module (inference mode)."""
    k1, k2, k3, k4, k5, k6, k7, k8 = jax.random.split(key, 8)
    # Conv2d(4, 8, k=1): torch weight (8,4,1,1) -> matmul form (4,8)
    w1 = (jax.random.normal(k1, (8, 4), jnp.float32) * 0.1).T
    b1 = jax.random.normal(k2, (8,), jnp.float32) * 0.1
    # BatchNorm2d(8): gamma/beta + running stats, eps=1e-5
    gamma = 1.0 + 0.1 * jax.random.normal(k3, (8,), jnp.float32)
    beta = 0.1 * jax.random.normal(k4, (8,), jnp.float32)
    running_mean = 0.1 * jax.random.normal(k5, (8,), jnp.float32)
    running_var = 1.0 + jax.nn.softplus(jax.random.normal(k6, (8,), jnp.float32))
    eps = 1e-5
    scale = gamma / jnp.sqrt(running_var + eps)
    shift = beta - running_mean * scale
    # Conv2d(8, 3, k=1): torch weight (3,8,1,1) -> matmul form (8,3)
    w2 = (jax.random.normal(k7, (3, 8), jnp.float32) * 0.1).T
    b2 = jax.random.normal(k8, (3,), jnp.float32) * 0.1
    return (w1, b1, scale, shift, w2, b2)


def pack_params(raw):
    """Fold inference BatchNorm into the second 1x1 conv and flatten for SMEM."""
    w1, b1, scale, shift, w2, b2 = raw
    w2f = scale[:, None] * w2          # diag(scale) @ W2
    b2f = shift @ w2 + b2              # exact: BN sits right before conv2
    packed = jnp.concatenate([w1.reshape(-1), b1, w2f.reshape(-1), b2f])
    assert packed.shape == (_NPARAMS,)
    return packed.astype(jnp.float32)


def _reference(a, b, raw):
    """Pure-JAX reference with UNfolded BatchNorm (independent check)."""
    w1, b1, scale, shift, w2, b2 = raw
    x = jnp.concatenate([a, b], axis=1)                    # (N,4,H,W)
    xt = jnp.transpose(x, (0, 2, 3, 1))                    # (N,H,W,4)
    h = jnp.einsum("nhwc,cd->nhwd", xt, w1,
                   precision=jax.lax.Precision.HIGHEST) + b1
    h = jnp.where(h > 0, h, 0.2 * h)
    h = h * scale + shift
    y = jnp.einsum("nhwc,cd->nhwd", h, w2,
                   precision=jax.lax.Precision.HIGHEST) + b2
    return jnp.transpose(y, (0, 3, 1, 2))                  # (N,3,H,W)


if __name__ == "__main__":
    key = jax.random.PRNGKey(0)
    ka, kb, kp = jax.random.split(key, 3)
    N, H, W = 2, 16, 16
    a = jax.random.normal(ka, (N, 3, H, W), jnp.float32)
    b = jax.random.normal(kb, (N, 1, H, W), jnp.float32)
    raw = make_params(kp)
    packed = pack_params(raw)

    out = simple_input_fusion(a, b, packed)
    out = jax.block_until_ready(out)

    ref = _reference(a, b, raw)
    assert out.shape == (N, 3, H, W), out.shape
    max_err = float(jnp.max(jnp.abs(out - ref)))
    assert max_err < 1e-4, max_err
    print("KERNEL_OK")
</pallas_src>

<mosaic_0001>
module attributes {stable_mosaic.version = 11 : i64} {
  func.func @_fusion_kernel(%arg0: i32, %arg1: i32, %arg2: memref<67xf32, #tpu.memory_space<smem>>, %arg3: memref<1x3x2x128xf32, #tpu.memory_space<vmem>>, %arg4: memref<1x1x2x128xf32, #tpu.memory_space<vmem>>, %arg5: memref<1x3x2x128xf32, #tpu.memory_space<vmem>>) attributes {dimension_semantics = [#tpu.dimension_semantics<parallel>, #tpu.dimension_semantics<parallel>], iteration_bounds = array<i64: 2, 1>, scalar_prefetch = 0 : i64, scratch_operands = 0 : i64, tpu.core_type = #tpu.core_type<tc>, window_params = [{transform_indices = @transform_0, window_bounds = array<i64: 67>}, {transform_indices = @transform_1, window_bounds = array<i64: 1, 3, 2, 128>}, {transform_indices = @transform_2, window_bounds = array<i64: 1, 1, 2, 128>}, {transform_indices = @transform_3, window_bounds = array<i64: 1, 3, 2, 128>}]} {
    %c0 = arith.constant 0 : index
    %0 = memref.load %arg2[%c0] : memref<67xf32, #tpu.memory_space<smem>>
    %c1 = arith.constant 1 : index
    %1 = memref.load %arg2[%c1] : memref<67xf32, #tpu.memory_space<smem>>
    %c2 = arith.constant 2 : index
    %2 = memref.load %arg2[%c2] : memref<67xf32, #tpu.memory_space<smem>>
    %c3 = arith.constant 3 : index
    %3 = memref.load %arg2[%c3] : memref<67xf32, #tpu.memory_space<smem>>
    %c4 = arith.constant 4 : index
    %4 = memref.load %arg2[%c4] : memref<67xf32, #tpu.memory_space<smem>>
    %c5 = arith.constant 5 : index
    %5 = memref.load %arg2[%c5] : memref<67xf32, #tpu.memory_space<smem>>
    %c6 = arith.constant 6 : index
    %6 = memref.load %arg2[%c6] : memref<67xf32, #tpu.memory_space<smem>>
    %c7 = arith.constant 7 : index
    %7 = memref.load %arg2[%c7] : memref<67xf32, #tpu.memory_space<smem>>
    %c8 = arith.constant 8 : index
    %8 = memref.load %arg2[%c8] : memref<67xf32, #tpu.memory_space<smem>>
    %c9 = arith.constant 9 : index
    %9 = memref.load %arg2[%c9] : memref<67xf32, #tpu.memory_space<smem>>
    %c10 = arith.constant 10 : index
    %10 = memref.load %arg2[%c10] : memref<67xf32, #tpu.memory_space<smem>>
    %c11 = arith.constant 11 : index
    %11 = memref.load %arg2[%c11] : memref<67xf32, #tpu.memory_space<smem>>
    %c12 = arith.constant 12 : index
    %12 = memref.load %arg2[%c12] : memref<67xf32, #tpu.memory_space<smem>>
    %c13 = arith.constant 13 : index
    %13 = memref.load %arg2[%c13] : memref<67xf32, #tpu.memory_space<smem>>
    %c14 = arith.constant 14 : index
    %14 = memref.load %arg2[%c14] : memref<67xf32, #tpu.memory_space<smem>>
    %c15 = arith.constant 15 : index
    %15 = memref.load %arg2[%c15] : memref<67xf32, #tpu.memory_space<smem>>
    %c16 = arith.constant 16 : index
    %16 = memref.load %arg2[%c16] : memref<67xf32, #tpu.memory_space<smem>>
    %c17 = arith.constant 17 : index
    %17 = memref.load %arg2[%c17] : memref<67xf32, #tpu.memory_space<smem>>
    %c18 = arith.constant 18 : index
    %18 = memref.load %arg2[%c18] : memref<67xf32, #tpu.memory_space<smem>>
    %c19 = arith.constant 19 : index
    %19 = memref.load %arg2[%c19] : memref<67xf32, #tpu.memory_space<smem>>
    %c20 = arith.constant 20 : index
    %20 = memref.load %arg2[%c20] : memref<67xf32, #tpu.memory_space<smem>>
    %c21 = arith.constant 21 : index
    %21 = memref.load %arg2[%c21] : memref<67xf32, #tpu.memory_space<smem>>
    %c22 = arith.constant 22 : index
    %22 = memref.load %arg2[%c22] : memref<67xf32, #tpu.memory_space<smem>>
    %c23 = arith.constant 23 : index
    %23 = memref.load %arg2[%c23] : memref<67xf32, #tpu.memory_space<smem>>
    %c24 = arith.constant 24 : index
    %24 = memref.load %arg2[%c24] : memref<67xf32, #tpu.memory_space<smem>>
    %c25 = arith.constant 25 : index
    %25 = memref.load %arg2[%c25] : memref<67xf32, #tpu.memory_space<smem>>
    %c26 = arith.constant 26 : index
    %26 = memref.load %arg2[%c26] : memref<67xf32, #tpu.memory_space<smem>>
    %c27 = arith.constant 27 : index
    %27 = memref.load %arg2[%c27] : memref<67xf32, #tpu.memory_space<smem>>
    %c28 = arith.constant 28 : index
    %28 = memref.load %arg2[%c28] : memref<67xf32, #tpu.memory_space<smem>>
    %c29 = arith.constant 29 : index
    %29 = memref.load %arg2[%c29] : memref<67xf32, #tpu.memory_space<smem>>
    %c30 = arith.constant 30 : index
    %30 = memref.load %arg2[%c30] : memref<67xf32, #tpu.memory_space<smem>>
    %c31 = arith.constant 31 : index
    %31 = memref.load %arg2[%c31] : memref<67xf32, #tpu.memory_space<smem>>
    %c32 = arith.constant 32 : index
    %32 = memref.load %arg2[%c32] : memref<67xf32, #tpu.memory_space<smem>>
    %c33 = arith.constant 33 : index
    %33 = memref.load %arg2[%c33] : memref<67xf32, #tpu.memory_space<smem>>
    %c34 = arith.constant 34 : index
    %34 = memref.load %arg2[%c34] : memref<67xf32, #tpu.memory_space<smem>>
    %c35 = arith.constant 35 : index
    %35 = memref.load %arg2[%c35] : memref<67xf32, #tpu.memory_space<smem>>
    %c36 = arith.constant 36 : index
    %36 = memref.load %arg2[%c36] : memref<67xf32, #tpu.memory_space<smem>>
    %c37 = arith.constant 37 : index
    %37 = memref.load %arg2[%c37] : memref<67xf32, #tpu.memory_space<smem>>
    %c38 = arith.constant 38 : index
    %38 = memref.load %arg2[%c38] : memref<67xf32, #tpu.memory_space<smem>>
    %c39 = arith.constant 39 : index
    %39 = memref.load %arg2[%c39] : memref<67xf32, #tpu.memory_space<smem>>
    %c40 = arith.constant 40 : index
    %40 = memref.load %arg2[%c40] : memref<67xf32, #tpu.memory_space<smem>>
    %c41 = arith.constant 41 : index
    %41 = memref.load %arg2[%c41] : memref<67xf32, #tpu.memory_space<smem>>
    %c42 = arith.constant 42 : index
    %42 = memref.load %arg2[%c42] : memref<67xf32, #tpu.memory_space<smem>>
    %c43 = arith.constant 43 : index
    %43 = memref.load %arg2[%c43] : memref<67xf32, #tpu.memory_space<smem>>
    %c44 = arith.constant 44 : index
    %44 = memref.load %arg2[%c44] : memref<67xf32, #tpu.memory_space<smem>>
    %c45 = arith.constant 45 : index
    %45 = memref.load %arg2[%c45] : memref<67xf32, #tpu.memory_space<smem>>
    %c46 = arith.constant 46 : index
    %46 = memref.load %arg2[%c46] : memref<67xf32, #tpu.memory_space<smem>>
    %c47 = arith.constant 47 : index
    %47 = memref.load %arg2[%c47] : memref<67xf32, #tpu.memory_space<smem>>
    %c48 = arith.constant 48 : index
    %48 = memref.load %arg2[%c48] : memref<67xf32, #tpu.memory_space<smem>>
    %c49 = arith.constant 49 : index
    %49 = memref.load %arg2[%c49] : memref<67xf32, #tpu.memory_space<smem>>
    %c50 = arith.constant 50 : index
    %50 = memref.load %arg2[%c50] : memref<67xf32, #tpu.memory_space<smem>>
    %c51 = arith.constant 51 : index
    %51 = memref.load %arg2[%c51] : memref<67xf32, #tpu.memory_space<smem>>
    %c52 = arith.constant 52 : index
    %52 = memref.load %arg2[%c52] : memref<67xf32, #tpu.memory_space<smem>>
    %c53 = arith.constant 53 : index
    %53 = memref.load %arg2[%c53] : memref<67xf32, #tpu.memory_space<smem>>
    %c54 = arith.constant 54 : index
    %54 = memref.load %arg2[%c54] : memref<67xf32, #tpu.memory_space<smem>>
    %c55 = arith.constant 55 : index
    %55 = memref.load %arg2[%c55] : memref<67xf32, #tpu.memory_space<smem>>
    %c56 = arith.constant 56 : index
    %56 = memref.load %arg2[%c56] : memref<67xf32, #tpu.memory_space<smem>>
    %c57 = arith.constant 57 : index
    %57 = memref.load %arg2[%c57] : memref<67xf32, #tpu.memory_space<smem>>
    %c58 = arith.constant 58 : index
    %58 = memref.load %arg2[%c58] : memref<67xf32, #tpu.memory_space<smem>>
    %c59 = arith.constant 59 : index
    %59 = memref.load %arg2[%c59] : memref<67xf32, #tpu.memory_space<smem>>
    %c60 = arith.constant 60 : index
    %60 = memref.load %arg2[%c60] : memref<67xf32, #tpu.memory_space<smem>>
    %c61 = arith.constant 61 : index
    %61 = memref.load %arg2[%c61] : memref<67xf32, #tpu.memory_space<smem>>
    %c62 = arith.constant 62 : index
    %62 = memref.load %arg2[%c62] : memref<67xf32, #tpu.memory_space<smem>>
    %c63 = arith.constant 63 : index
    %63 = memref.load %arg2[%c63] : memref<67xf32, #tpu.memory_space<smem>>
    %c64 = arith.constant 64 : index
    %64 = memref.load %arg2[%c64] : memref<67xf32, #tpu.memory_space<smem>>
    %c65 = arith.constant 65 : index
    %65 = memref.load %arg2[%c65] : memref<67xf32, #tpu.memory_space<smem>>
    %c66 = arith.constant 66 : index
    %66 = memref.load %arg2[%c66] : memref<67xf32, #tpu.memory_space<smem>>
    %c0_0 = arith.constant 0 : index
    %c0_1 = arith.constant 0 : index
    %c0_2 = arith.constant 0 : index
    %c0_3 = arith.constant 0 : index
    %67 = vector.load %arg3[%c0_0, %c0_1, %c0_2, %c0_3] : memref<1x3x2x128xf32, #tpu.memory_space<vmem>>, vector<1x1x2x128xf32>
    %68 = vector.shape_cast %67 : vector<1x1x2x128xf32> to vector<2x128xf32>
    %c0_4 = arith.constant 0 : index
    %c1_5 = arith.constant 1 : index
    %c0_6 = arith.constant 0 : index
    %c0_7 = arith.constant 0 : index
    %69 = vector.load %arg3[%c0_4, %c1_5, %c0_6, %c0_7] : memref<1x3x2x128xf32, #tpu.memory_space<vmem>>, vector<1x1x2x128xf32>
    %70 = vector.shape_cast %69 : vector<1x1x2x128xf32> to vector<2x128xf32>
    %c0_8 = arith.constant 0 : index
    %c2_9 = arith.constant 2 : index
    %c0_10 = arith.constant 0 : index
    %c0_11 = arith.constant 0 : index
    %71 = vector.load %arg3[%c0_8, %c2_9, %c0_10, %c0_11] : memref<1x3x2x128xf32, #tpu.memory_space<vmem>>, vector<1x1x2x128xf32>
    %72 = vector.shape_cast %71 : vector<1x1x2x128xf32> to vector<2x128xf32>
    %c0_12 = arith.constant 0 : index
    %c0_13 = arith.constant 0 : index
    %c0_14 = arith.constant 0 : index
    %c0_15 = arith.constant 0 : index
    %73 = vector.load %arg4[%c0_12, %c0_13, %c0_14, %c0_15] : memref<1x1x2x128xf32, #tpu.memory_space<vmem>>, vector<1x1x2x128xf32>
    %74 = vector.shape_cast %73 : vector<1x1x2x128xf32> to vector<2x128xf32>
    %75 = vector.broadcast %0 : f32 to vector<2x128xf32>
    %76 = arith.mulf %68, %75 : vector<2x128xf32>
    %77 = vector.broadcast %8 : f32 to vector<2x128xf32>
    %78 = arith.mulf %70, %77 : vector<2x128xf32>
    %79 = arith.addf %76, %78 : vector<2x128xf32>
    %80 = vector.broadcast %16 : f32 to vector<2x128xf32>
    %81 = arith.mulf %72, %80 : vector<2x128xf32>
    %82 = arith.addf %79, %81 : vector<2x128xf32>
    %83 = vector.broadcast %24 : f32 to vector<2x128xf32>
    %84 = arith.mulf %74, %83 : vector<2x128xf32>
    %85 = arith.addf %82, %84 : vector<2x128xf32>
    %86 = vector.broadcast %32 : f32 to vector<2x128xf32>
    %87 = arith.addf %85, %86 : vector<2x128xf32>
    %cst = arith.constant 2.000000e-01 : f32
    %88 = vector.broadcast %cst : f32 to vector<2x128xf32>
    %89 = arith.mulf %88, %87 : vector<2x128xf32>
    %90 = arith.maximumf %87, %89 : vector<2x128xf32>
    %91 = vector.broadcast %40 : f32 to vector<2x128xf32>
    %92 = arith.mulf %90, %91 : vector<2x128xf32>
    %93 = vector.broadcast %41 : f32 to vector<2x128xf32>
    %94 = arith.mulf %90, %93 : vector<2x128xf32>
    %95 = vector.broadcast %42 : f32 to vector<2x128xf32>
    %96 = arith.mulf %90, %95 : vector<2x128xf32>
    %97 = vector.broadcast %1 : f32 to vector<2x128xf32>
    %98 = arith.mulf %68, %97 : vector<2x128xf32>
    %99 = vector.broadcast %9 : f32 to vector<2x128xf32>
    %100 = arith.mulf %70, %99 : vector<2x128xf32>
    %101 = arith.addf %98, %100 : vector<2x128xf32>
    %102 = vector.broadcast %17 : f32 to vector<2x128xf32>
    %103 = arith.mulf %72, %102 : vector<2x128xf32>
    %104 = arith.addf %101, %103 : vector<2x128xf32>
    %105 = vector.broadcast %25 : f32 to vector<2x128xf32>
    %106 = arith.mulf %74, %105 : vector<2x128xf32>
    %107 = arith.addf %104, %106 : vector<2x128xf32>
    %108 = vector.broadcast %33 : f32 to vector<2x128xf32>
    %109 = arith.addf %107, %108 : vector<2x128xf32>
    %cst_16 = arith.constant 2.000000e-01 : f32
    %110 = vector.broadcast %cst_16 : f32 to vector<2x128xf32>
    %111 = arith.mulf %110, %109 : vector<2x128xf32>
    %112 = arith.maximumf %109, %111 : vector<2x128xf32>
    %113 = vector.broadcast %43 : f32 to vector<2x128xf32>
    %114 = arith.mulf %112, %113 : vector<2x128xf32>
    %115 = arith.addf %92, %114 : vector<2x128xf32>
    %116 = vector.broadcast %44 : f32 to vector<2x128xf32>
    %117 = arith.mulf %112, %116 : vector<2x128xf32>
    %118 = arith.addf %94, %117 : vector<2x128xf32>
    %119 = vector.broadcast %45 : f32 to vector<2x128xf32>
    %120 = arith.mulf %112, %119 : vector<2x128xf32>
    %121 = arith.addf %96, %120 : vector<2x128xf32>
    %122 = vector.broadcast %2 : f32 to vector<2x128xf32>
    %123 = arith.mulf %68, %122 : vector<2x128xf32>
    %124 = vector.broadcast %10 : f32 to vector<2x128xf32>
    %125 = arith.mulf %70, %124 : vector<2x128xf32>
    %126 = arith.addf %123, %125 : vector<2x128xf32>
    %127 = vector.broadcast %18 : f32 to vector<2x128xf32>
    %128 = arith.mulf %72, %127 : vector<2x128xf32>
    %129 = arith.addf %126, %128 : vector<2x128xf32>
    %130 = vector.broadcast %26 : f32 to vector<2x128xf32>
    %131 = arith.mulf %74, %130 : vector<2x128xf32>
    %132 = arith.addf %129, %131 : vector<2x128xf32>
    %133 = vector.broadcast %34 : f32 to vector<2x128xf32>
    %134 = arith.addf %132, %133 : vector<2x128xf32>
    %cst_17 = arith.constant 2.000000e-01 : f32
    %135 = vector.broadcast %cst_17 : f32 to vector<2x128xf32>
    %136 = arith.mulf %135, %134 : vector<2x128xf32>
    %137 = arith.maximumf %134, %136 : vector<2x128xf32>
    %138 = vector.broadcast %46 : f32 to vector<2x128xf32>
    %139 = arith.mulf %137, %138 : vector<2x128xf32>
    %140 = arith.addf %115, %139 : vector<2x128xf32>
    %141 = vector.broadcast %47 : f32 to vector<2x128xf32>
    %142 = arith.mulf %137, %141 : vector<2x128xf32>
    %143 = arith.addf %118, %142 : vector<2x128xf32>
    %144 = vector.broadcast %48 : f32 to vector<2x128xf32>
    %145 = arith.mulf %137, %144 : vector<2x128xf32>
    %146 = arith.addf %121, %145 : vector<2x128xf32>
    %147 = vector.broadcast %3 : f32 to vector<2x128xf32>
    %148 = arith.mulf %68, %147 : vector<2x128xf32>
    %149 = vector.broadcast %11 : f32 to vector<2x128xf32>
    %150 = arith.mulf %70, %149 : vector<2x128xf32>
    %151 = arith.addf %148, %150 : vector<2x128xf32>
    %152 = vector.broadcast %19 : f32 to vector<2x128xf32>
    %153 = arith.mulf %72, %152 : vector<2x128xf32>
    %154 = arith.addf %151, %153 : vector<2x128xf32>
    %155 = vector.broadcast %27 : f32 to vector<2x128xf32>
    %156 = arith.mulf %74, %155 : vector<2x128xf32>
    %157 = arith.addf %154, %156 : vector<2x128xf32>
    %158 = vector.broadcast %35 : f32 to vector<2x128xf32>
    %159 = arith.addf %157, %158 : vector<2x128xf32>
    %cst_18 = arith.constant 2.000000e-01 : f32
    %160 = vector.broadcast %cst_18 : f32 to vector<2x128xf32>
    %161 = arith.mulf %160, %159 : vector<2x128xf32>
    %162 = arith.maximumf %159, %161 : vector<2x128xf32>
    %163 = vector.broadcast %49 : f32 to vector<2x128xf32>
    %164 = arith.mulf %162, %163 : vector<2x128xf32>
    %165 = arith.addf %140, %164 : vector<2x128xf32>
    %166 = vector.broadcast %50 : f32 to vector<2x128xf32>
    %167 = arith.mulf %162, %166 : vector<2x128xf32>
    %168 = arith.addf %143, %167 : vector<2x128xf32>
    %169 = vector.broadcast %51 : f32 to vector<2x128xf32>
    %170 = arith.mulf %162, %169 : vector<2x128xf32>
    %171 = arith.addf %146, %170 : vector<2x128xf32>
    %172 = vector.broadcast %4 : f32 to vector<2x128xf32>
    %173 = arith.mulf %68, %172 : vector<2x128xf32>
    %174 = vector.broadcast %12 : f32 to vector<2x128xf32>
    %175 = arith.mulf %70, %174 : vector<2x128xf32>
    %176 = arith.addf %173, %175 : vector<2x128xf32>
    %177 = vector.broadcast %20 : f32 to vector<2x128xf32>
    %178 = arith.mulf %72, %177 : vector<2x128xf32>
    %179 = arith.addf %176, %178 : vector<2x128xf32>
    %180 = vector.broadcast %28 : f32 to vector<2x128xf32>
    %181 = arith.mulf %74, %180 : vector<2x128xf32>
    %182 = arith.addf %179, %181 : vector<2x128xf32>
    %183 = vector.broadcast %36 : f32 to vector<2x128xf32>
    %184 = arith.addf %182, %183 : vector<2x128xf32>
    %cst_19 = arith.constant 2.000000e-01 : f32
    %185 = vector.broadcast %cst_19 : f32 to vector<2x128xf32>
    %186 = arith.mulf %185, %184 : vector<2x128xf32>
    %187 = arith.maximumf %184, %186 : vector<2x128xf32>
    %188 = vector.broadcast %52 : f32 to vector<2x128xf32>
    %189 = arith.mulf %187, %188 : vector<2x128xf32>
    %190 = arith.addf %165, %189 : vector<2x128xf32>
    %191 = vector.broadcast %53 : f32 to vector<2x128xf32>
    %192 = arith.mulf %187, %191 : vector<2x128xf32>
    %193 = arith.addf %168, %192 : vector<2x128xf32>
    %194 = vector.broadcast %54 : f32 to vector<2x128xf32>
    %195 = arith.mulf %187, %194 : vector<2x128xf32>
    %196 = arith.addf %171, %195 : vector<2x128xf32>
    %197 = vector.broadcast %5 : f32 to vector<2x128xf32>
    %198 = arith.mulf %68, %197 : vector<2x128xf32>
    %199 = vector.broadcast %13 : f32 to vector<2x128xf32>
    %200 = arith.mulf %70, %199 : vector<2x128xf32>
    %201 = arith.addf %198, %200 : vector<2x128xf32>
    %202 = vector.broadcast %21 : f32 to vector<2x128xf32>
    %203 = arith.mulf %72, %202 : vector<2x128xf32>
    %204 = arith.addf %201, %203 : vector<2x128xf32>
    %205 = vector.broadcast %29 : f32 to vector<2x128xf32>
    %206 = arith.mulf %74, %205 : vector<2x128xf32>
    %207 = arith.addf %204, %206 : vector<2x128xf32>
    %208 = vector.broadcast %37 : f32 to vector<2x128xf32>
    %209 = arith.addf %207, %208 : vector<2x128xf32>
    %cst_20 = arith.constant 2.000000e-01 : f32
    %210 = vector.broadcast %cst_20 : f32 to vector<2x128xf32>
    %211 = arith.mulf %210, %209 : vector<2x128xf32>
    %212 = arith.maximumf %209, %211 : vector<2x128xf32>
    %213 = vector.broadcast %55 : f32 to vector<2x128xf32>
    %214 = arith.mulf %212, %213 : vector<2x128xf32>
    %215 = arith.addf %190, %214 : vector<2x128xf32>
    %216 = vector.broadcast %56 : f32 to vector<2x128xf32>
    %217 = arith.mulf %212, %216 : vector<2x128xf32>
    %218 = arith.addf %193, %217 : vector<2x128xf32>
    %219 = vector.broadcast %57 : f32 to vector<2x128xf32>
    %220 = arith.mulf %212, %219 : vector<2x128xf32>
    %221 = arith.addf %196, %220 : vector<2x128xf32>
    %222 = vector.broadcast %6 : f32 to vector<2x128xf32>
    %223 = arith.mulf %68, %222 : vector<2x128xf32>
    %224 = vector.broadcast %14 : f32 to vector<2x128xf32>
    %225 = arith.mulf %70, %224 : vector<2x128xf32>
    %226 = arith.addf %223, %225 : vector<2x128xf32>
    %227 = vector.broadcast %22 : f32 to vector<2x128xf32>
    %228 = arith.mulf %72, %227 : vector<2x128xf32>
    %229 = arith.addf %226, %228 : vector<2x128xf32>
    %230 = vector.broadcast %30 : f32 to vector<2x128xf32>
    %231 = arith.mulf %74, %230 : vector<2x128xf32>
    %232 = arith.addf %229, %231 : vector<2x128xf32>
    %233 = vector.broadcast %38 : f32 to vector<2x128xf32>
    %234 = arith.addf %232, %233 : vector<2x128xf32>
    %cst_21 = arith.constant 2.000000e-01 : f32
    %235 = vector.broadcast %cst_21 : f32 to vector<2x128xf32>
    %236 = arith.mulf %235, %234 : vector<2x128xf32>
    %237 = arith.maximumf %234, %236 : vector<2x128xf32>
    %238 = vector.broadcast %58 : f32 to vector<2x128xf32>
    %239 = arith.mulf %237, %238 : vector<2x128xf32>
    %240 = arith.addf %215, %239 : vector<2x128xf32>
    %241 = vector.broadcast %59 : f32 to vector<2x128xf32>
    %242 = arith.mulf %237, %241 : vector<2x128xf32>
    %243 = arith.addf %218, %242 : vector<2x128xf32>
    %244 = vector.broadcast %60 : f32 to vector<2x128xf32>
    %245 = arith.mulf %237, %244 : vector<2x128xf32>
    %246 = arith.addf %221, %245 : vector<2x128xf32>
    %247 = vector.broadcast %7 : f32 to vector<2x128xf32>
    %248 = arith.mulf %68, %247 : vector<2x128xf32>
    %249 = vector.broadcast %15 : f32 to vector<2x128xf32>
    %250 = arith.mulf %70, %249 : vector<2x128xf32>
    %251 = arith.addf %248, %250 : vector<2x128xf32>
    %252 = vector.broadcast %23 : f32 to vector<2x128xf32>
    %253 = arith.mulf %72, %252 : vector<2x128xf32>
    %254 = arith.addf %251, %253 : vector<2x128xf32>
    %255 = vector.broadcast %31 : f32 to vector<2x128xf32>
    %256 = arith.mulf %74, %255 : vector<2x128xf32>
    %257 = arith.addf %254, %256 : vector<2x128xf32>
    %258 = vector.broadcast %39 : f32 to vector<2x128xf32>
    %259 = arith.addf %257, %258 : vector<2x128xf32>
    %cst_22 = arith.constant 2.000000e-01 : f32
    %260 = vector.broadcast %cst_22 : f32 to vector<2x128xf32>
    %261 = arith.mulf %260, %259 : vector<2x128xf32>
    %262 = arith.maximumf %259, %261 : vector<2x128xf32>
    %263 = vector.broadcast %61 : f32 to vector<2x128xf32>
    %264 = arith.mulf %262, %263 : vector<2x128xf32>
    %265 = arith.addf %240, %264 : vector<2x128xf32>
    %266 = vector.broadcast %62 : f32 to vector<2x128xf32>
    %267 = arith.mulf %262, %266 : vector<2x128xf32>
    %268 = arith.addf %243, %267 : vector<2x128xf32>
    %269 = vector.broadcast %63 : f32 to vector<2x128xf32>
    %270 = arith.mulf %262, %269 : vector<2x128xf32>
    %271 = arith.addf %246, %270 : vector<2x128xf32>
    %272 = vector.broadcast %64 : f32 to vector<2x128xf32>
    %273 = arith.addf %265, %272 : vector<2x128xf32>
    %c0_23 = arith.constant 0 : index
    %c0_24 = arith.constant 0 : index
    %c0_25 = arith.constant 0 : index
    %c0_26 = arith.constant 0 : index
    %274 = vector.load %arg5[%c0_23, %c0_24, %c0_25, %c0_26] : memref<1x3x2x128xf32, #tpu.memory_space<vmem>>, vector<1x1x2x128xf32>
    %275 = vector.shape_cast %274 : vector<1x1x2x128xf32> to vector<2x128xf32>
    %276 = vector.shape_cast %273 : vector<2x128xf32> to vector<1x1x2x128xf32>
    tpu.vector_store %arg5[%c0_23, %c0_24, %c0_25, %c0_26], %276 {strides = array<i32>} : memref<1x3x2x128xf32, #tpu.memory_space<vmem>>, vector<1x1x2x128xf32>,
    %277 = vector.broadcast %65 : f32 to vector<2x128xf32>
    %278 = arith.addf %268, %277 : vector<2x128xf32>
    %c0_27 = arith.constant 0 : index
    %c1_28 = arith.constant 1 : index
    %c0_29 = arith.constant 0 : index
    %c0_30 = arith.constant 0 : index
    %279 = vector.load %arg5[%c0_27, %c1_28, %c0_29, %c0_30] : memref<1x3x2x128xf32, #tpu.memory_space<vmem>>, vector<1x1x2x128xf32>
    %280 = vector.shape_cast %279 : vector<1x1x2x128xf32> to vector<2x128xf32>
    %281 = vector.shape_cast %278 : vector<2x128xf32> to vector<1x1x2x128xf32>
    tpu.vector_store %arg5[%c0_27, %c1_28, %c0_29, %c0_30], %281 {strides = array<i32>} : memref<1x3x2x128xf32, #tpu.memory_space<vmem>>, vector<1x1x2x128xf32>,
    %282 = vector.broadcast %66 : f32 to vector<2x128xf32>
    %283 = arith.addf %271, %282 : vector<2x128xf32>
    %c0_31 = arith.constant 0 : index
    %c2_32 = arith.constant 2 : index
    %c0_33 = arith.constant 0 : index
    %c0_34 = arith.constant 0 : index
    %284 = vector.load %arg5[%c0_31, %c2_32, %c0_33, %c0_34] : memref<1x3x2x128xf32, #tpu.memory_space<vmem>>, vector<1x1x2x128xf32>
    %285 = vector.shape_cast %284 : vector<1x1x2x128xf32> to vector<2x128xf32>
    %286 = vector.shape_cast %283 : vector<2x128xf32> to vector<1x1x2x128xf32>
    tpu.vector_store %arg5[%c0_31, %c2_32, %c0_33, %c0_34], %286 {strides = array<i32>} : memref<1x3x2x128xf32, #tpu.memory_space<vmem>>, vector<1x1x2x128xf32>,
    return
  }
  func.func @transform_0(%arg0: i32, %arg1: i32) -> i32 {
    %c0_i32 = arith.constant 0 : i32
    %c0_i32_0 = arith.constant 0 : i32
    return %c0_i32 : i32
  }
  func.func @transform_1(%arg0: i32, %arg1: i32) -> (i32, i32, i32, i32) {
    %c0_i32 = arith.constant 0 : i32
    %c0_i32_0 = arith.constant 0 : i32
    %c0_i32_1 = arith.constant 0 : i32
    return %arg0, %c0_i32, %arg1, %c0_i32_0 : i32, i32, i32, i32
  }
  func.func @transform_2(%arg0: i32, %arg1: i32) -> (i32, i32, i32, i32) {
    %c0_i32 = arith.constant 0 : i32
    %c0_i32_0 = arith.constant 0 : i32
    %c0_i32_1 = arith.constant 0 : i32
    return %arg0, %c0_i32, %arg1, %c0_i32_0 : i32, i32, i32, i32
  }
  func.func @transform_3(%arg0: i32, %arg1: i32) -> (i32, i32, i32, i32) {
    %c0_i32 = arith.constant 0 : i32
    %c0_i32_0 = arith.constant 0 : i32
    %c0_i32_1 = arith.constant 0 : i32
    return %arg0, %c0_i32, %arg1, %c0_i32_0 : i32, i32, i32, i32
  }
}

</mosaic_0001>

<bundles_post_ra>
// kernel: tpu_custom_call.1
= control target key start
LH: loop header
LB: loop body
LE: loop exit
PB: predicated region body
PF: predicated region fallthrough
CT: control target
= control target key end

     0   :  { %s1434_s0 = inlined_call_operand.hbm [shape: f32[67], index: 0, kind: input, shape index: {}]   ;;  %s1435_s1 = inlined_call_operand.hbm [shape: f32[2,3,2,128], index: 1, kind: input, shape index: {}]   ;;  %s1436_s2 = inlined_call_operand.hbm [shape: f32[2,1,2,128], index: 2, kind: input, shape index: {}]   ;;  %s1437_s3 = inlined_call_operand.hbm [shape: f32[2,3,2,128], index: 3, kind: output, shape index: {}]  }
   0x1   :  { %1445 = sst [smem:[#allocation20_spill]] %s1434_s0 }
   0x2   :  { %1446 = sst [smem:[#allocation21_spill]] %s1435_s1 }
   0x3   :  { %1447 = sst [smem:[#allocation22_spill]] %s1436_s2 }
   0x4   :  { %8 = vsyncpa [#allocation5], 0 }
   0x5   :  { %9 = vsyncpa [#allocation3], 0 }
   0x6   :  { %11 = vsyncpa [#allocation3 + $0x1], 0 }
   0x7   :  { %12 = vsyncpa [#allocation8], 0 }
   0x8   :  { %14 = vsyncpa [#allocation8 + $0x1], 0 }
   0x9   :  { %15 = vsyncpa [#allocation4], 0 }
   0xa   :  { %17 = vsyncpa [#allocation4 + $0x1], 0  ;;  %s1022_s12 = smov 0   ;;  %s1024_s13 = smov 0  }
   0xb   :  { %s1026_s14 = smov 0   ;;  %s1028_s15 = smov 0  }
   0xc   :  { %s1030_s16 = smov 0   ;;  %s1032_s17 = smov 0  }
   0xd LB: > { %1448 = sst [smem:[#allocation14_spill]] %s976_s13  ;;  %s667_s18 = sadd.s32 4294967295, %s992_s17   ;;  %s992_s17 = sphi %s1032_s17, %s23_s17   ;;  %s988_s16 = sphi %s1030_s16, %s1471_s16   ;;  %s984_s15 = sphi %s1028_s15, %s1470_s15   ;;  %s980_s14 = sphi %s1026_s14, %s1469_s14   ;;  %s976_s13 = sphi %s1024_s13, %s1468_s13   ;;  %s972_s12 = sphi %s1022_s12, %s1467_s12  }
   0xe   : > { %1449 = sst [smem:[#allocation15_spill]] %s980_s14  ;;  %s668_s19 = sadd.s32 4294967294, %s992_s17  }
   0xf   : > { %1450 = sst [smem:[#allocation16_spill]] %s988_s16  ;;  %s65_s20 = sadd.s32 1, %s980_s14 }
  0x10   : > { %1451 = sst [smem:[#allocation17_spill]] %s992_s17  ;;  %p72_p0 = scmp.ne.s32.totalorder %s980_s14, %s976_s13 }
  0x11   : > { %p73_p1 = scmp.eq.s32.totalorder %s992_s17, 0  ;;  %p78_p2 = scmp.ne.s32.totalorder %s976_s13, %s972_s12 }
  0x12   : > { %p1060_p3 = scmp.eq.s32.totalorder %s667_s18, 0  ;;  %p132_p4 = scmp.eq.s32.totalorder %s667_s18, 1 }
  0x13   : > { %p74_p5 = por %p73_p1, %p72_p0  ;;  %p138_p6 = scmp.eq.s32.totalorder %s668_s19, 1 }
  0x14   : > { %p1066_p7 = por %p1060_p3, %p78_p2  ;;  %p1070_p8 = por %p132_p4, %p72_p0 }
  0x15   : > { %p1074_p9 = por %p138_p6, %p78_p2  ;;  %p669_p10 = scmp.ge.s32.totalorder %s992_s17, 1 }
  0x16   : > { %p145_p11 = scmp.lt.s32.totalorder %s992_s17, 3  ;;  %p781_p1 = scmp.lt.s32.totalorder %s992_s17, 2 }
  0x17   : > { %s1455_s24 = scalar_select %p1074_p9, 1, 0 }
  0x18   : > { %p1081_p13 = pnand %p669_p10, %p145_p11  ;;  %s1087_s26 = sand.u32 1, %s980_s14  }
  0x19   : > { %p1091_p2 = pnand %p781_p1, %p74_p5  ;;  %s35_s28 = sadd.s32 1, %s988_s16 }
  0x1a   : > { %p765_p0 = pneg %p1081_p13  ;;  %s751_s29 = smul.u32 6, %s1087_s26 }
  0x1b   : > { %p37_p6 = scmp.ge.s32.totalorder %s35_s28, 2  ;;  %s994_s30 = smov [#allocation2]  }
  0x1c   : > { %p766_p4 = pnand %p765_p0, %p1060_p3  ;;  %s1458_s0 = sld [smem:[#allocation20_spill]] }
  0x1d   : > { %s1473_s28 = smov (%p37_p6, %s35_s28), 0  ;;  %s752_s6 = smul.u32 96, %s988_s16 }
  0x1e   : > { %1459 = sst [smem:[#allocation18_spill]] %s1473_s28  ;;  %s60_s7 = ssub.s32 %s988_s16, %s1473_s28 }
  0x1f   : > { %s171_s8 = scalar_lea.vmem [#allocation6], %s751_s29  ;;  %p63_p5 = scmp.eq.s32.totalorder %s60_s7, 0 }
  0x20   : > { %s179_s9 = sshll.u32 %s171_s8, 4  ;;  %s1460_s1 = sld [smem:[#allocation21_spill]]  ;;  %s180_s9 = int_to_ptr.vmem [resolvable:$true] %s179_s9 }
  0x21   : > { %s1113_s19 = scalar_select %p63_p5, %s980_s14, %s65_s20  }
  0x22   : > { %768 = dma.hbm_to_smem (!%p766_p4), %s1458_s0, 16, %s994_s30, [#allocation5]  }
  0x23   : > { %1461 = sst [smem:[#allocation19_spill]] %s1113_s19  ;;  %s168_s17 = scalar_lea.sflag [#allocation3], %s1087_s26 }
  0x24   : > { %p850_p10 = pneg %p1091_p2  ;;  %s861_s30 = scalar_lea.vmem %s180_s9, 96 }
  0x25   : > { %p862_p11 = scmp.ne.s32.totalorder %s180_s9, %s861_s30  ;;  %s995_s29 = smov [#allocation6]  }
  0x26   : > { %s178_s18 = scalar_lea.hbm %s1460_s1, %s752_s6  ;;  %s866_s4 = sshll.u32 %s995_s29, 4  ;;  %s867_s4 = int_to_ptr.vmem [resolvable:$false] %s866_s4 }
  0x27   : > { %p864_p1 = pnand %p862_p11, %p850_p10  ;;  %s868_s5 = scalar_lea.vmem %s867_s4, 192 }
  0x28   : > { %p869_p4 = scmp.lt.s32.totalorder %s180_s9, %s867_s4  ;;  %p870_p6 = scmp.lt.s32.totalorder %s868_s5, %s861_s30 }
  0x29   : > { %p865_p0 = pneg %p864_p1 }
  0x2a   : > { %p871_p12 = por %p870_p6, %p869_p4 }
  0x2c   : > { %p872_p9 = pnand %p871_p12, %p865_p0 }
  0x2e   : > { %875 = shalt.err (!%p872_p9)
}
  0x2f   : > { %s996_s20 = smov 32   ;;  %s997_s6 = smov 2  }
  0x30   : > { %772 = dma.hbm_to_vmem [thread:$0]  (!%p1091_p2), %s178_s18, 96, %s180_s9, %s168_s17, %s996_s20, %s996_s20, %s997_s6  }
  0x31   : > { %s673_s7 = sshll.u32 %s1087_s26, 1  ;;  %s674_s8 = sshll.u32 %s988_s16, 5 }
  0x32   : > { %s1462_s2 = sld [smem:[#allocation22_spill]]  ;;  %s193_s4 = scalar_lea.vmem [#allocation7], %s673_s7 }
  0x33   : > { %s201_s30 = sshll.u32 %s193_s4, 4  ;;  %s190_s5 = scalar_lea.sflag [#allocation8], %s1087_s26  ;;  %s202_s30 = int_to_ptr.vmem [resolvable:$true] %s201_s30 }
  0x34   : > { %s889_s0 = scalar_lea.vmem %s202_s30, 32  ;;  %s998_s1 = smov [#allocation7]  }
  0x35   : > { %p890_p9 = scmp.ne.s32.totalorder %s202_s30, %s889_s0  ;;  %s894_s28 = sshll.u32 %s998_s1, 4  ;;  %s895_s28 = int_to_ptr.vmem [resolvable:$false] %s894_s28 }
  0x36   : > { %s896_s17 = scalar_lea.vmem %s895_s28, 64  ;;  %p897_p11 = scmp.lt.s32.totalorder %s202_s30, %s895_s28 }
  0x37   : > { %p892_p12 = pnand %p890_p9, %p850_p10  ;;  %p898_p1 = scmp.lt.s32.totalorder %s896_s17, %s889_s0 }
  0x38   : > { %s199_s29 = scalar_lea.hbm %s1462_s2, %s674_s8 }
  0x39   : > { %p893_p5 = pneg %p892_p12  ;;  %p899_p0 = por %p898_p1, %p897_p11 }
  0x3b   : > { %p900_p4 = pnand %p899_p0, %p893_p5 }
  0x3d   : > { %903 = shalt.err (!%p900_p4)
}
  0x3e   : > { %775 = dma.hbm_to_vmem [thread:$0]  (!%p1091_p2), %s199_s29, 32, %s202_s30, %s190_s5  }
  0x3f   : > { %210 = sbr.rel (%p1081_p13) target bundleno = 169 (0xa9), region = 32 }
  0x44   : > { %955 = dma.done.wait (%p1060_p3), [#allocation5], 16  }
  0x45   : > { %957 = vsyncadd (%p1060_p3), [#allocation5], 4294967280  ;;  %s1141_s1 = sand.u32 1, %s976_s13  }
  0x46   : > { %s1441_s0 = smul.u32 6, %s1141_s1  ;;  %s217_s26 = scalar_lea.sflag [#allocation3], %s1141_s1 }
  0x48   : > { %s1147_s27 = scalar_lea.vmem [#allocation6], %s1441_s0 }
  0x49   : > { %959 = dma.done.wait (%p1066_p7), %s217_s26, 96  }
  0x4a   : > { %961 = vsyncadd (%p1066_p7), %s217_s26, 4294967200  ;;  %s677_s21 = sshll.u32 %s1141_s1, 1  ;;  %s226_s25 = scalar_lea.sflag [#allocation8], %s1141_s1 }
  0x4b   : > { %s1155_s28 = scalar_lea.vmem [#allocation7], %s677_s21 }
  0x4c   : > { %963 = dma.done.wait (%p1066_p7), %s226_s25, 32  }
  0x4d   : > { %965 = vsyncadd (%p1066_p7), %s226_s25, 4294967264 }
  0x4e   : > { %234 = sfence }
  0x4f   : > { %s1161_s9 = sld [smem:[#allocation2]]  ;;  %v325_v0 = vld [vmem:[%s1147_s27] sm:$0x3]  ;;  %v1205_v3 = vld [vmem:[%s1147_s27 + $0x2] sm:$0x3] }
  0x50   : > { %s1163_s18 = sld [smem:[#allocation2 + $0x1]]  ;;  %v1225_v17 = vld [vmem:[%s1147_s27 + $0x4] sm:$0x3]  ;;  %v1247_v34 = vld [vmem:[%s1155_s28] sm:$0x3] }
  0x51   : > { %s1165_s20 = sld [smem:[#allocation2 + $0x2]] }
  0x52   : > { %s1167_s6 = sld [smem:[#allocation2 + $0x3]] }
  0x53   : > { %s1169_s7 = sld [smem:[#allocation2 + $0x4]] }
  0x54   : > { %s1171_s8 = sld [smem:[#allocation2 + $0x5]] }
  0x55   : > { %s1173_s10 = sld [smem:[#allocation2 + $0x6]]  ;;  %v331_v1 = vstv %s1161_s9 }
  0x56   : > { %s1175_s22 = sld [smem:[#allocation2 + $0x7]]  ;;  %v352_v2 = vstv %s1163_s18  ;;  %v332_v9 = vmul.f32 %v331_v1, %v325_v0 }
  0x57   : > { %s685_s11 = sld [smem:[#allocation2 + $0x8]]  ;;  %v376_v5 = vstv %s1165_s20  ;;  %v353_v10 = vmul.f32 %v352_v2, %v325_v0 }
  0x58   : > { %s1177_s29 = sld [smem:[#allocation2 + $0x9]]  ;;  %v400_v8 = vstv %s1167_s6  ;;  %v377_v14 = vmul.f32 %v376_v5, %v325_v0 }
  0x59   : > { %s1179_s4 = sld [smem:[#allocation2 + $0xa]]  ;;  %v424_v12 = vstv %s1169_s7  ;;  %v401_v21 = vmul.f32 %v400_v8, %v325_v0 }
  0x5a   : > { %s1181_s30 = sld [smem:[#allocation2 + $0xb]]  ;;  %v448_v15 = vstv %s1171_s8  ;;  %v425_v24 = vmul.f32 %v424_v12, %v325_v0 }
  0x5b   : > { %s1183_s5 = sld [smem:[#allocation2 + $0xc]]  ;;  %v472_v16 = vstv %s1173_s10  ;;  %v449_v28 = vmul.f32 %v448_v15, %v325_v0 }
  0x5c   : > { %s1185_s17 = sld [smem:[#allocation2 + $0xd]]  ;;  %v496_v25 = vstv %s1175_s22  ;;  %v473_v29 = vmul.f32 %v472_v16, %v325_v0 }
  0x5d   : > { %s1187_s26 = sld [smem:[#allocation2 + $0xe]]  ;;  %v333_v4 = vstv %s685_s11  ;;  %v497_v38 = vmul.f32 %v496_v25, %v325_v0 }
  0x5e   : > { %s1189_s21 = sld [smem:[#allocation2 + $0xf]]  ;;  %v354_v6 = vstv %s1177_s29  ;;  %v334_v13 = vmul.f32 %v1205_v3, %v333_v4 }
  0x5f   : > { %s1191_s25 = sld [smem:[#allocation2 + $0x10]]  ;;  %v378_v7 = vstv %s1179_s4  ;;  %v355_v19 = vmul.f32 %v1205_v3, %v354_v6 }
  0x60   : > { %s1193_s0 = sld [smem:[#allocation2 + $0x11]]  ;;  %v402_v11 = vstv %s1181_s30  ;;  %v379_v20 = vmul.f32 %v1205_v3, %v378_v7  ;;  %v335_v30 = vadd.f32 %v334_v13, %v332_v9 }
  0x61   : > { %s1195_s2 = sld [smem:[#allocation2 + $0x12]]  ;;  %v403_v23 = vmul.f32 %v1205_v3, %v402_v11  ;;  %v426_v27 = vstv %s1183_s5  ;;  %v356_v35 = vadd.f32 %v355_v19, %v353_v10 }
  0x62   : > { %s1197_s16 = sld [smem:[#allocation2 + $0x13]]  ;;  %v450_v32 = vstv %s1185_s17  ;;  %v380_v37 = vadd.f32 %v379_v20, %v377_v14  ;;  %v427_v42 = vmul.f32 %v1205_v3, %v426_v27 }
  0x63   : > { %s1202_s19 = sld [smem:[#allocation2 + $0x14]]  ;;  %v474_v33 = vstv %s1187_s26  ;;  %v404_v40 = vadd.f32 %v403_v23, %v401_v21  ;;  %v451_v44 = vmul.f32 %v1205_v3, %v450_v32 }
  0x64   : > { %s1208_s14 = sld [smem:[#allocation2 + $0x15]]  ;;  %v475_v45 = vmul.f32 %v1205_v3, %v474_v33  ;;  %v498_v46 = vstv %s1189_s21  ;;  %v428_v59 = vadd.f32 %v427_v42, %v425_v24 }
  0x65   : > { %s1213_s13 = sld [smem:[#allocation2 + $0x16]]  ;;  %v336_v18 = vstv %s1191_s25  ;;  %v499_v58 = vmul.f32 %v1205_v3, %v498_v46  ;;  %v452_v63 = vadd.f32 %v451_v44, %v449_v28 }
  0x66   : > { %s1217_s9 = sld [smem:[#allocation2 + $0x17]]  ;;  %v357_v22 = vstv %s1193_s0  ;;  %v337_v31 = vmul.f32 %v1225_v17, %v336_v18  ;;  %v476_v7 = vadd.f32 %v475_v45, %v473_v29 }
  0x67   : > { %s1222_s18 = sld [smem:[#allocation2 + $0x18]]  ;;  %v381_v26 = vstv %s1195_s2  ;;  %v358_v36 = vmul.f32 %v1225_v17, %v357_v22  ;;  %v500_v8 = vadd.f32 %v499_v58, %v497_v38 }
  0x68   : > { %s1230_s20 = sld [smem:[#allocation2 + $0x19]]  ;;  %v382_v39 = vmul.f32 %v1225_v17, %v381_v26  ;;  %v405_v41 = vstv %s1197_s16  ;;  %v338_v47 = vadd.f32 %v337_v31, %v335_v30 }
  0x69   : > { %s1235_s6 = sld [smem:[#allocation2 + $0x1a]]  ;;  %v429_v50 = vstv %s1202_s19  ;;  %v359_v51 = vadd.f32 %v358_v36, %v356_v35  ;;  %v406_v54 = vmul.f32 %v1225_v17, %v405_v41 }
  0x6a   : > { %s1239_s27 = sld [smem:[#allocation2 + $0x1b]]  ;;  %v383_v55 = vadd.f32 %v382_v39, %v380_v37  ;;  %v430_v60 = vmul.f32 %v1225_v17, %v429_v50  ;;  %v453_v61 = vstv %s1208_s14 }
  0x6b   : > { %s1244_s0 = sld [smem:[#allocation2 + $0x1c]]  ;;  %v477_v0 = vstv %s1213_s13  ;;  %v407_v2 = vadd.f32 %v406_v54, %v404_v40  ;;  %v454_v6 = vmul.f32 %v1225_v17, %v453_v61 }
  0x6c   : > { %s1250_s2 = sld [smem:[#allocation2 + $0x1d]]  ;;  %v431_v10 = vadd.f32 %v430_v60, %v428_v59  ;;  %v478_v11 = vmul.f32 %v1225_v17, %v477_v0  ;;  %v501_v12 = vstv %s1217_s9 }
  0x6d   : > { %s1255_s7 = sld [smem:[#allocation2 + $0x1e]]  ;;  %v339_v43 = vstv %s1222_s18  ;;  %v502_v25 = vmul.f32 %v1225_v17, %v501_v12  ;;  %v455_v27 = vadd.f32 %v454_v6, %v452_v63 }
  0x6e   : > { %s1261_s28 = sld [smem:[#allocation2 + $0x1f]]  ;;  %v340_v48 = vmul.f32 %v339_v43, %v1247_v34  ;;  %v360_v49 = vstv %s1230_s20  ;;  %v479_v31 = vadd.f32 %v478_v11, %v476_v7 }
  0x6f   : > { %s1266_s16 = sld [smem:[#allocation2 + $0x20]]  ;;  %v361_v52 = vmul.f32 %v360_v49, %v1247_v34  ;;  %v384_v53 = vstv %s1235_s6  ;;  %v503_v37 = vadd.f32 %v502_v25, %v500_v8 }
  0x70   : > { %s1271_s8 = sld [smem:[#allocation2 + $0x21]]  ;;  %v385_v56 = vmul.f32 %v384_v53, %v1247_v34  ;;  %v408_v57 = vstv %s1239_s27  ;;  %v341_v62 = vadd.f32 %v340_v48, %v338_v47 }
  0x71   : > { %s1276_s10 = sld [smem:[#allocation2 + $0x22]]  ;;  %v362_v1 = vadd.f32 %v361_v52, %v359_v51  ;;  %v409_v3 = vmul.f32 %v408_v57, %v1247_v34  ;;  %v432_v4 = vstv %s1244_s0 }
  0x72   : > { %s1280_s19 = sld [smem:[#allocation2 + $0x23]]  ;;  %v386_v5 = vadd.f32 %v385_v56, %v383_v55  ;;  %v433_v15 = vmul.f32 %v432_v4, %v1247_v34  ;;  %v456_v16 = vstv %s1250_s2 }
  0x73   : > { %s1283_s22 = sld [smem:[#allocation2 + $0x24]]  ;;  %v410_v20 = vadd.f32 %v409_v3, %v407_v2  ;;  %v480_v21 = vstv %s1255_s7  ;;  %v457_v28 = vmul.f32 %v456_v16, %v1247_v34 }
  0x74   : > { %s1287_s11 = sld [smem:[#allocation2 + $0x25]]  ;;  %v504_v29 = vstv %s1261_s28  ;;  %v434_v30 = vadd.f32 %v433_v15, %v431_v10  ;;  %v481_v32 = vmul.f32 %v480_v21, %v1247_v34 }
  0x75   : > { %s1290_s14 = sld [smem:[#allocation2 + $0x26]]  ;;  %v342_v9 = vstv %s1266_s16  ;;  %v505_v38 = vmul.f32 %v504_v29, %v1247_v34  ;;  %v458_v41 = vadd.f32 %v457_v28, %v455_v27 }
  0x76   : > { %s1295_s13 = sld [smem:[#allocation2 + $0x27]]  ;;  %v343_v13 = vadd.f32 %v342_v9, %v341_v62  ;;  %v363_v14 = vstv %s1271_s8  ;;  %v482_v45 = vadd.f32 %v481_v32, %v479_v31 }
  0x77   : > { %s1300_s29 = sld [smem:[#allocation2 + $0x28]]  ;;  %v364_v18 = vadd.f32 %v363_v14, %v362_v1  ;;  %v387_v19 = vstv %s1276_s10  ;;  %v506_v52 = vadd.f32 %v505_v38, %v503_v37 }
  0x78   : > { %s1304_s4 = sld [smem:[#allocation2 + $0x29]]  ;;  %v344_v22 = vmul.f32 0.2, %v343_v13  ;;  %v388_v23 = vadd.f32 %v387_v19, %v386_v5  ;;  %v411_v24 = vstv %s1280_s19 }
  0x79   : > { %s1308_s30 = sld [smem:[#allocation2 + $0x2a]]  ;;  %v365_v26 = vmul.f32 0.2, %v364_v18  ;;  %v412_v17 = vadd.f32 %v411_v24, %v410_v20  ;;  %v435_v35 = vstv %s1283_s22 }
  0x7a   : > { %s1312_s5 = sld [smem:[#allocation2 + $0x2b]]  ;;  %v345_v33 = vmax.f32 %v343_v13, %v344_v22  ;;  %v389_v36 = vmul.f32 0.2, %v388_v23  ;;  %v436_v43 = vadd.f32 %v435_v35, %v434_v30  ;;  %v459_v44 = vstv %s1287_s11 }
  0x7b   : > { %s1315_s17 = sld [smem:[#allocation2 + $0x2c]]  ;;  %v366_v40 = vmax.f32 %v364_v18, %v365_v26  ;;  %v413_v48 = vmul.f32 0.2, %v412_v17  ;;  %v483_v34 = vstv %s1290_s14  ;;  %v460_v56 = vadd.f32 %v459_v44, %v458_v41 }
  0x7c   : > { %s1318_s26 = sld [smem:[#allocation2 + $0x2d]]  ;;  %v390_v51 = vmax.f32 %v388_v23, %v389_v36  ;;  %v437_v59 = vmul.f32 0.2, %v436_v43  ;;  %v484_v60 = vadd.f32 %v483_v34, %v482_v45  ;;  %v507_v4 = vstv %s1295_s13 }
  0x7d   : > { %s1321_s21 = sld [smem:[#allocation2 + $0x2e]]  ;;  %v346_v39 = vstv %s1300_s29  ;;  %v414_v0 = vmax.f32 %v412_v17, %v413_v48  ;;  %v461_v8 = vmul.f32 0.2, %v460_v56  ;;  %v508_v16 = vadd.f32 %v507_v4, %v506_v52 }
  0x7e   : > { %s1324_s25 = sld [smem:[#allocation2 + $0x2f]]  ;;  %v348_v42 = vstv %s1304_s4  ;;  %v347_v46 = vmul.f32 %v346_v39, %v345_v33  ;;  %v438_v12 = vmax.f32 %v436_v43, %v437_v59  ;;  %v485_v21 = vmul.f32 0.2, %v484_v60 }
  0x7f   : > { %s1328_s9 = sld [smem:[#allocation2 + $0x30]]  ;;  %v350_v47 = vstv %s1308_s30  ;;  %v349_v49 = vmul.f32 %v348_v42, %v345_v33  ;;  %v462_v25 = vmax.f32 %v460_v56, %v461_v8  ;;  %v509_v32 = vmul.f32 0.2, %v508_v16  ;;  %s754_s30 = smul.u32 96, %s984_s15 }
  0x80   : > { %s1332_s18 = sld [smem:[#allocation2 + $0x31]]  ;;  %v367_v50 = vstv %s1312_s5  ;;  %v351_v53 = vmul.f32 %v350_v47, %v345_v33  ;;  %v486_v36 = vmax.f32 %v484_v60, %v485_v21  ;;  %s1463_s5 = smul.u32 6, %s1141_s1 }
  0x81   : > { %s1335_s20 = sld [smem:[#allocation2 + $0x32]]  ;;  %v368_v54 = vmul.f32 %v367_v50, %v366_v40  ;;  %v370_v55 = vstv %s1315_s17  ;;  %s532_s15 = scalar_lea.sflag [#allocation4], %s1141_s1 }
  0x82   : > { %s1338_s6 = sld [smem:[#allocation2 + $0x33]]  ;;  %v371_v57 = vmul.f32 %v370_v55, %v366_v40  ;;  %v373_v58 = vstv %s1318_s26  ;;  %s257_s17 = scalar_lea.vmem [#allocation9], %s1463_s5 }
  0x83   : > { %s1341_s27 = sld [smem:[#allocation2 + $0x34]]  ;;  %v369_v61 = vadd.f32 %v368_v54, %v347_v46  ;;  %v374_v62 = vmul.f32 %v373_v58, %v366_v40  ;;  %v391_v63 = vstv %s1321_s21  ;;  %v510_v46 = vmax.f32 %v508_v16, %v509_v32  ;;  %s546_s26 = sshll.u32 %s257_s17, 4  ;;  %s1386_s26 = int_to_ptr.vmem [resolvable:$true] %s546_s26 }
  0x84   : > { %s1344_s0 = sld [smem:[#allocation2 + $0x35]]  ;;  %v372_v1 = vadd.f32 %v371_v57, %v349_v49  ;;  %v392_v2 = vmul.f32 %v391_v63, %v390_v51  ;;  %v394_v3 = vstv %s1324_s25 }
  0x85   : > { %s1348_s2 = sld [smem:[#allocation2 + $0x36]]  ;;  %v375_v5 = vadd.f32 %v374_v62, %v351_v53  ;;  %v395_v6 = vmul.f32 %v394_v3, %v390_v51  ;;  %v397_v7 = vstv %s1328_s9  ;;  %s1384_s9 = scalar_lea.hbm %s1437_s3, %s754_s30 }
  0x86   : > { %s1351_s7 = sld [smem:[#allocation2 + $0x37]]  ;;  %v393_v9 = vadd.f32 %v392_v2, %v369_v61  ;;  %v398_v10 = vmul.f32 %v397_v7, %v390_v51  ;;  %v415_v11 = vstv %s1332_s18  ;;  %s904_s18 = scalar_lea.vmem %s1386_s26, 96 }
  0x87   : > { %s1354_s28 = sld [smem:[#allocation2 + $0x38]]  ;;  %v396_v13 = vadd.f32 %v395_v6, %v372_v1  ;;  %v416_v14 = vmul.f32 %v415_v11, %v414_v0  ;;  %v418_v15 = vstv %s1335_s20  ;;  %p905_p3 = scmp.ne.s32.totalorder %s1386_s26, %s904_s18 }
  0x88   : > { %s1357_s16 = sld [smem:[#allocation2 + $0x39]]  ;;  %v399_v18 = vadd.f32 %v398_v10, %v375_v5  ;;  %v419_v19 = vmul.f32 %v418_v15, %v414_v0  ;;  %v421_v20 = vstv %s1338_s6  ;;  %s999_s20 = smov [#allocation9]  }
  0x89   : > { %s1360_s8 = sld [smem:[#allocation2 + $0x3a]]  ;;  %v417_v22 = vadd.f32 %v416_v14, %v393_v9  ;;  %v422_v23 = vmul.f32 %v421_v20, %v414_v0  ;;  %v439_v24 = vstv %s1341_s27  ;;  %p906_p7 = pnand %p905_p3, %p1070_p8 }
  0x8a   : > { %s1363_s10 = sld [smem:[#allocation2 + $0x3b]]  ;;  %v420_v26 = vadd.f32 %v419_v19, %v396_v13  ;;  %v440_v27 = vmul.f32 %v439_v24, %v438_v12  ;;  %v442_v28 = vstv %s1344_s0  ;;  %s908_s6 = sshll.u32 %s999_s20, 4  ;;  %s909_s6 = int_to_ptr.vmem [resolvable:$false] %s908_s6 }
  0x8b   : > { %s1366_s19 = sld [smem:[#allocation2 + $0x3c]]  ;;  %v423_v29 = vadd.f32 %v422_v23, %v399_v18  ;;  %v443_v30 = vmul.f32 %v442_v28, %v438_v12  ;;  %v445_v31 = vstv %s1348_s2  ;;  %p907_p13 = pneg %p906_p7 }
  0x8c   : > { %s738_s22 = sld [smem:[#allocation2 + $0x3d]]  ;;  %v441_v33 = vadd.f32 %v440_v27, %v417_v22  ;;  %v446_v17 = vmul.f32 %v445_v31, %v438_v12  ;;  %v463_v35 = vstv %s1351_s7  ;;  %s910_s27 = scalar_lea.vmem %s909_s6, 192 }
  0x8d   : > { %s739_s11 = sld [smem:[#allocation2 + $0x3e]]  ;;  %v444_v37 = vadd.f32 %v443_v30, %v420_v26  ;;  %v464_v38 = vmul.f32 %v463_v35, %v462_v25  ;;  %v466_v39 = vstv %s1354_s28  ;;  %p911_p2 = scmp.lt.s32.totalorder %s1386_s26, %s909_s6 }
  0x8e   : > { %s740_s14 = sld [smem:[#allocation2 + $0x3f]]  ;;  %v447_v40 = vadd.f32 %v446_v17, %v423_v29  ;;  %v467_v41 = vmul.f32 %v466_v39, %v462_v25  ;;  %v469_v42 = vstv %s1357_s16  ;;  %p912_p10 = scmp.lt.s32.totalorder %s910_s27, %s904_s18 }
  0x8f   : > { %s1372_s13 = sld [smem:[#allocation2 + $0x40]]  ;;  %v465_v43 = vadd.f32 %v464_v38, %v441_v33  ;;  %v470_v44 = vmul.f32 %v469_v42, %v462_v25  ;;  %v487_v45 = vstv %s1360_s8 }
  0x90   : > { %s742_s29 = sld [smem:[#allocation2 + $0x41]]  ;;  %v468_v47 = vadd.f32 %v467_v41, %v444_v37  ;;  %v488_v48 = vmul.f32 %v487_v45, %v486_v36  ;;  %v490_v34 = vstv %s1363_s10  ;;  %p913_p6 = por %p912_p10, %p911_p2 }
  0x91   : > { %s743_s4 = sld [smem:[#allocation2 + $0x42]]  ;;  %v471_v49 = vadd.f32 %v470_v44, %v447_v40  ;;  %v491_v50 = vmul.f32 %v490_v34, %v486_v36  ;;  %v493_v51 = vstv %s1366_s19 }
  0x92   : > { %v489_v52 = vadd.f32 %v488_v48, %v465_v43  ;;  %v494_v53 = vmul.f32 %v493_v51, %v486_v36  ;;  %v511_v54 = vstv %s738_s22  ;;  %p914_p9 = pnand %p913_p6, %p907_p13 }
  0x93   : > { %v492_v55 = vadd.f32 %v491_v50, %v468_v47  ;;  %v512_v56 = vmul.f32 %v511_v54, %v510_v46  ;;  %v514_v57 = vstv %s739_s11 }
  0x94   : > { %v495_v58 = vadd.f32 %v494_v53, %v471_v49  ;;  %v515_v59 = vmul.f32 %v514_v57, %v510_v46  ;;  %v517_v60 = vstv %s740_s14 }
  0x95   : > { %v513_v61 = vadd.f32 %v512_v56, %v489_v52  ;;  %v518_v62 = vmul.f32 %v517_v60, %v510_v46  ;;  %v520_v63 = vstv %s1372_s13 }
  0x96   : > { %v516_v0 = vadd.f32 %v515_v59, %v492_v55  ;;  %v523_v1 = vstv %s742_s29 }
  0x97   : > { %v519_v2 = vadd.f32 %v518_v62, %v495_v58  ;;  %v521_v3 = vadd.f32 %v520_v63, %v513_v61  ;;  %v527_v4 = vstv %s743_s4 }
  0x98   : > { %v524_v5 = vadd.f32 %v523_v1, %v516_v0 }
  0x99   : > { %522 = vst [vmem:[%s257_s17] sm:$0x3] %v521_v3  ;;  %v528_v6 = vadd.f32 %v527_v4, %v519_v2 }
  0x9a   : > { %746 = vst [vmem:[%s257_s17 + $0x2] sm:$0x3] %v524_v5 }
  0x9b   : > { %747 = vst [vmem:[%s257_s17 + $0x4] sm:$0x3] %v528_v6 }
  0x9c   : > { %917 = shalt.err (!%p914_p9)
}
  0x9d   : > { %s918_s0 = scalar_lea.hbm %s1384_s9, 96  ;;  %s922_s28 = scalar_lea.hbm %s1437_s3, 192 }
  0x9e   : > { %p919_p12 = scmp.ne.s32.totalorder %s1384_s9, %s918_s0  ;;  %p923_p1 = scmp.lt.s32.totalorder %s1384_s9, %s1437_s3 }
  0x9f   : > { %p924_p0 = scmp.lt.s32.totalorder %s922_s28, %s918_s0 }
  0xa0   : > { %p920_p5 = pnand %p919_p12, %p1070_p8 }
  0xa1   : > { %p925_p4 = por %p924_p0, %p923_p1 }
  0xa2   : > { %p921_p11 = pneg %p920_p5 }
  0xa4   : > { %p926_p3 = pnand %p925_p4, %p921_p11 }
  0xa6   : > { %929 = shalt.err (!%p926_p3)
}
  0xa7   : > { %s1000_s10 = smov 32   ;;  %s1001_s19 = smov 2  }
  0xa8   : > { %763 = dma.vmem_to_hbm [thread:$0]  (%p1070_p8), %s1386_s26, 96, %s1384_s9, %s532_s15, %s1000_s10, %s1000_s10, %s1001_s19  }
  0xa9 PF: > { %s1464_s22 = sld [smem:[#allocation17_spill]]  ;;  %s561_s11 = sand.u32 1, %s972_s12  }
  0xaa   : > { %p1465_p7 = scmp.ne.s32.totalorder %s1455_s24, 0  ;;  %s562_s14 = scalar_lea.sflag [#allocation4], %s561_s11 }
  0xaf   : > { %p1466_p13 = scmp.ge.s32.totalorder %s1464_s22, 2 }
  0xb1   : > { %p777_p2 = pnand %p1466_p13, %p1465_p7 }
  0xb3   : > { %p778_p10 = pneg %p777_p2 }
  0xb5   : > { %967 = dma.done.wait (%p778_p10), %s562_s14, 96  }
  0xb6   : > { %969 = vsyncadd (%p778_p10), %s562_s14, 4294967200  ;;  %s23_s17 = sadd.s32 1, %s1464_s22   ;;  %s1467_s12 = sld [smem:[#allocation14_spill]] }
  0xb7   : > { %p20_p6 = scmp.ge.s32.totalorder %s23_s17, 4   ;;  %s1468_s13 = sld [smem:[#allocation15_spill]] }
  0xb8   : > { %s1469_s14 = sld [smem:[#allocation19_spill]] }
  0xb9   : > { %s1470_s15 = sld [smem:[#allocation16_spill]]  ;;  %22 = sbr.rel (!%p20_p6) target bundleno = 13 (0xd), region = 99 }
  0xba   : > { %s1471_s16 = sld [smem:[#allocation18_spill]] }
  0xbe   :  { %567 = vsyncpa [#allocation3], 1 }
  0xbf   :  { %569 = vsyncpa [#allocation3 + $0x1], 1 }
  0xc0   :  { %570 = vsyncpa [#allocation8], 1 }
  0xc1   :  { %572 = vsyncpa [#allocation8 + $0x1], 1 }
  0xc2   :  { %573 = vsyncpa [#allocation4], 1 }
  0xc3   :  { %575 = vsyncpa [#allocation4 + $0x1], 1 }
  0xc4   :  { %576 = vsyncpa [#allocation5], 1 }
  0xc5   :  { %578 = vsyncpa [#allocation5 + $0x1], 1 }

</bundles_post_ra>
